<compile_context>
chip_gen: v5e
topology: v5e:2x2
jax: 0.10.0
libtpu: 0.0.40
codegen_flags: <defaults>
</compile_context>

<pallas_src>
import functools

import jax
import jax.numpy as jnp
from jax.experimental import pallas as pl
from jax.experimental.pallas import tpu as pltpu


# ----------------------------------------------------------------------------
# Kernel
# ----------------------------------------------------------------------------
def _wide_mlp_kernel(x_ref, w1_ref, b1_ref, w2_ref, b2_ref, o_ref):
    s = pl.program_id(0)                      # hidden-axis split (parallel)
    k = pl.program_id(1)                      # hidden-tile index  (reduction)

    @pl.when(k == 0)
    def _():
        o_ref[...] = jnp.zeros_like(o_ref)    # per-split private accumulator

    # hidden tile: (B, th) = relu(x @ W1_tile + b1_tile), f32 accumulation
    h = jnp.dot(x_ref[...], w1_ref[...], preferred_element_type=jnp.float32)
    h = jnp.maximum(h + b1_ref[...], 0.0)

    # accumulate this hidden tile's contribution to the (B, O) output
    o_ref[...] += jnp.dot(h.astype(w2_ref.dtype), w2_ref[...],
                          preferred_element_type=jnp.float32)

    # add b2 exactly once (split 0, last reduction step)
    @pl.when((k == pl.num_programs(1) - 1) & (s == 0))
    def _():
        o_ref[...] += b2_ref[...]


# ----------------------------------------------------------------------------
# VMEM-budget-driven tile selection
# ----------------------------------------------------------------------------
def _vmem_need(tile_h, d, o, b, itemsize):
    lane = 128
    o_pad = max(o, lane)
    return (2 * d * tile_h * itemsize          # W1 tile, double-buffered
            + 2 * tile_h * o_pad * itemsize    # W2 tile, double-buffered (lane pad)
            + 2 * tile_h * 4                   # b1 tile (f32), double-buffered
            + b * d * itemsize                 # resident x
            + 2 * b * o_pad * 4)               # output block + b2 (f32, lane pad)


def _pick_tile_h(per_split_h, d, o, b, itemsize, budget_bytes):
    if _vmem_need(per_split_h, d, o, b, itemsize) <= budget_bytes:
        return per_split_h                     # whole split fits -> 1 grid step
    cands = [t for t in range(128, per_split_h, 128) if per_split_h % t == 0]
    for th in sorted(cands, reverse=True):
        if _vmem_need(th, d, o, b, itemsize) <= budget_bytes:
            return th
    return min(cands) if cands else per_split_h


# ----------------------------------------------------------------------------
# One-time parameter preparation (cast + contiguous pre-blocking)
# ----------------------------------------------------------------------------
def prepare_wide_model_params(w1, b1, w2, b2, *, n_splits=1,
                              compute_dtype=jnp.bfloat16, batch_hint=8,
                              vmem_budget_bytes=None):
    """w1: (D, H), b1: (H,), w2: (H, O), b2: (O,). Returns (arrays, cfg)."""
    D, H = w1.shape
    O = w2.shape[1]
    assert H % n_splits == 0, "hidden dim must split evenly across cores"
    per_split = H // n_splits

    if vmem_budget_bytes is None:
        try:
            cap = int(pltpu.get_tpu_info().vmem_capacity_bytes)
        except Exception:
            cap = 64 * 1024 * 1024             # conservative: v7x physical VMEM
        vmem_budget_bytes = cap // 2
    else:
        cap = 2 * vmem_budget_bytes

    itemsize = jnp.dtype(compute_dtype).itemsize
    tile_h = _pick_tile_h(per_split, D, O, batch_hint, itemsize,
                          vmem_budget_bytes)
    assert per_split % tile_h == 0
    n_tiles = H // tile_h

    # Pre-block so each grid step reads one fully contiguous slab.
    w1b = w1.astype(compute_dtype).reshape(D, n_tiles, tile_h).transpose(1, 0, 2)
    b1b = b1.astype(jnp.float32).reshape(n_tiles, 1, tile_h)
    w2b = w2.astype(compute_dtype).reshape(n_tiles, tile_h, O)
    b2b = b2.astype(jnp.float32).reshape(1, O)

    need = _vmem_need(tile_h, D, O, batch_hint, itemsize)
    vmem_limit = int(min(max(2 * need, 32 * 1024 * 1024), int(cap * 0.9)))
    cfg = dict(n_splits=n_splits, vmem_limit_bytes=vmem_limit)
    return (w1b, b1b, w2b, b2b), cfg


# ----------------------------------------------------------------------------
# Forward
# ----------------------------------------------------------------------------
@functools.partial(jax.jit, static_argnames=("n_splits", "vmem_limit_bytes"))
def wide_model_forward(x, w1b, b1b, w2b, b2b, *, n_splits=1,
                       vmem_limit_bytes=32 * 1024 * 1024):
    B = x.shape[0]
    x2 = x.reshape(B, -1)                      # == x.view(x.size(0), -1)
    n_tiles, D, tile_h = w1b.shape
    O = w2b.shape[-1]
    assert x2.shape[1] == D
    assert n_tiles % n_splits == 0
    nk = n_tiles // n_splits

    x2 = x2.astype(w1b.dtype)                  # bf16 (or f32) MXU inputs

    partials = pl.pallas_call(
        _wide_mlp_kernel,
        out_shape=jax.ShapeDtypeStruct((n_splits, B, O), jnp.float32),
        grid_spec=pltpu.PrefetchScalarGridSpec(
            num_scalar_prefetch=0,
            grid=(n_splits, nk),
            in_specs=[
                pl.BlockSpec((B, D), lambda s, k: (0, 0)),            # x resident
                pl.BlockSpec((None, D, tile_h),
                             lambda s, k: (s * nk + k, 0, 0)),        # W1 tile
                pl.BlockSpec((None, 1, tile_h),
                             lambda s, k: (s * nk + k, 0, 0)),        # b1 tile
                pl.BlockSpec((None, tile_h, O),
                             lambda s, k: (s * nk + k, 0, 0)),        # W2 tile
                pl.BlockSpec((1, O), lambda s, k: (0, 0)),            # b2 resident
            ],
            out_specs=pl.BlockSpec((None, B, O), lambda s, k: (s, 0, 0)),
        ),
        compiler_params=pltpu.CompilerParams(
            dimension_semantics=("parallel", "arbitrary"),
            vmem_limit_bytes=vmem_limit_bytes,
        ),
    )(x2, w1b, b1b, w2b, b2b)

    # Tiny (n_splits, B, O) partial-sum combine (no-op cost for n_splits=1).
    return jnp.sum(partials, axis=0)


# ----------------------------------------------------------------------------
# Init (mimics nn.Linear default U(-1/sqrt(fan_in), +1/sqrt(fan_in)))
# ----------------------------------------------------------------------------
def init_wide_model_params(key, input_dim, hidden_dim_scale, output_dim):
    hidden_dim = hidden_dim_scale * input_dim
    k1, k2, k3, k4 = jax.random.split(key, 4)
    bound1 = 1.0 / jnp.sqrt(input_dim)
    bound2 = 1.0 / jnp.sqrt(hidden_dim)
    # Stored transposed relative to PyTorch: (in, out).
    w1 = jax.random.uniform(k1, (input_dim, hidden_dim), jnp.float32,
                            -bound1, bound1)
    b1 = jax.random.uniform(k2, (hidden_dim,), jnp.float32, -bound1, bound1)
    w2 = jax.random.uniform(k3, (hidden_dim, output_dim), jnp.float32,
                            -bound2, bound2)
    b2 = jax.random.uniform(k4, (output_dim,), jnp.float32, -bound2, bound2)
    return w1, b1, w2, b2


if __name__ == "__main__":
    # Small shapes consistent with the module:
    #   batch=8, input image (C=4, H=8, W=8) -> input_dim = 256,
    #   hidden_dim_scale=4 -> hidden_dim = 1024, output_dim = 10.
    key = jax.random.PRNGKey(0)
    kx, kp = jax.random.split(key)

    B, C, Hs, Ws = 8, 4, 8, 8
    input_dim = C * Hs * Ws            # 256
    hidden_dim_scale = 4               # hidden_dim = 1024
    output_dim = 10

    x_img = jax.random.normal(kx, (B, C, Hs, Ws), jnp.float32)   # NCHW input
    w1, b1, w2, b2 = init_wide_model_params(
        kp, input_dim, hidden_dim_scale, output_dim)

    x_flat = x_img.reshape(B, -1)
    ref = jnp.maximum(x_flat @ w1 + b1, 0.0) @ w2 + b2           # pure-JAX ref

    # 1) Performance path: bf16 weights, f32 accumulation, single-step grid.
    params, cfg = prepare_wide_model_params(w1, b1, w2, b2, batch_hint=B)
    out = jax.block_until_ready(wide_model_forward(x_img, *params, **cfg))
    assert out.shape == (B, output_dim)
    assert jnp.allclose(out, ref, atol=3e-2, rtol=3e-2), "bf16 path mismatch"

    # 2) f32 path, tight tolerance vs reference.
    params32, cfg32 = prepare_wide_model_params(
        w1, b1, w2, b2, compute_dtype=jnp.float32, batch_hint=B)
    out32 = jax.block_until_ready(wide_model_forward(x_img, *params32, **cfg32))
    assert jnp.allclose(out32, ref, atol=1e-4, rtol=1e-4), "f32 path mismatch"

    # 3) Core-parallel hidden-axis split (v7x megacore style), private
    #    per-split accumulators + partial-sum combine.
    params_mc, cfg_mc = prepare_wide_model_params(
        w1, b1, w2, b2, n_splits=2, compute_dtype=jnp.float32, batch_hint=B)
    out_mc = jax.block_until_ready(wide_model_forward(x_img, *params_mc, **cfg_mc))
    assert jnp.allclose(out_mc, ref, atol=1e-4, rtol=1e-4), "split path mismatch"

    print("KERNEL_OK")
</pallas_src>

<mosaic_0001>
module attributes {stable_mosaic.version = 11 : i64} {
  func.func @_wide_mlp_kernel(%arg0: i32, %arg1: i32, %arg2: memref<8x256xbf16, #tpu.memory_space<vmem>>, %arg3: memref<1x256x1024xbf16, #tpu.memory_space<vmem>>, %arg4: memref<1x1x1024xf32, #tpu.memory_space<vmem>>, %arg5: memref<1x1024x10xbf16, #tpu.memory_space<vmem>>, %arg6: memref<1x10xf32, #tpu.memory_space<vmem>>, %arg7: memref<1x8x10xf32, #tpu.memory_space<vmem>>) attributes {dimension_semantics = [#tpu.dimension_semantics<parallel>, #tpu.dimension_semantics<arbitrary>], iteration_bounds = array<i64: 1, 1>, scalar_prefetch = 0 : i64, scratch_operands = 0 : i64, tpu.core_type = #tpu.core_type<tc>, window_params = [{pipeline_mode = #tpu.pipeline_mode<synchronous>, transform_indices = @transform_0, window_bounds = array<i64: 8, 256>}, {transform_indices = @transform_1, window_bounds = array<i64: 1, 256, 1024>}, {transform_indices = @transform_2, window_bounds = array<i64: 1, 1, 1024>}, {transform_indices = @transform_3, window_bounds = array<i64: 1, 1024, 10>}, {pipeline_mode = #tpu.pipeline_mode<synchronous>, transform_indices = @transform_4, window_bounds = array<i64: 1, 10>}, {transform_indices = @transform_5, window_bounds = array<i64: 1, 8, 10>}]} {
    %c0_i32 = arith.constant 0 : i32
    %0 = arith.cmpi eq, %arg1, %c0_i32 : i32
    %1 = arith.extui %0 : i1 to i32
    %c0_i32_0 = arith.constant 0 : i32
    %2 = arith.cmpi ne, %1, %c0_i32_0 : i32
    scf.if %2 {
      %cst_22 = arith.constant 0.000000e+00 : f32
      %28 = vector.broadcast %cst_22 : f32 to vector<8x10xf32>
      %c0_23 = arith.constant 0 : index
      %c0_24 = arith.constant 0 : index
      %c0_25 = arith.constant 0 : index
      %29 = vector.load %arg7[%c0_23, %c0_24, %c0_25] : memref<1x8x10xf32, #tpu.memory_space<vmem>>, vector<1x8x10xf32>
      %30 = vector.shape_cast %29 : vector<1x8x10xf32> to vector<8x10xf32>
      %31 = vector.shape_cast %28 : vector<8x10xf32> to vector<1x8x10xf32>
      tpu.vector_store %arg7[%c0_23, %c0_24, %c0_25], %31 {strides = array<i32>} : memref<1x8x10xf32, #tpu.memory_space<vmem>>, vector<1x8x10xf32>,
    } else {
    }
    %c0 = arith.constant 0 : index
    %c0_1 = arith.constant 0 : index
    %3 = vector.load %arg2[%c0, %c0_1] : memref<8x256xbf16, #tpu.memory_space<vmem>>, vector<8x256xbf16>
    %c0_2 = arith.constant 0 : index
    %c0_3 = arith.constant 0 : index
    %c0_4 = arith.constant 0 : index
    %4 = vector.load %arg3[%c0_2, %c0_3, %c0_4] : memref<1x256x1024xbf16, #tpu.memory_space<vmem>>, vector<1x256x1024xbf16>
    %5 = vector.shape_cast %4 : vector<1x256x1024xbf16> to vector<256x1024xbf16>
    %cst = arith.constant dense<0.000000e+00> : vector<8x1024xf32>
    %6 = tpu.matmul %3, %5, %cst {dimension_numbers = #tpu.dot_dimension_numbers<[1], [0], [0], [1], [0, 0, 1, 1], [], []>} : vector<8x256xbf16>, vector<256x1024xbf16>, vector<8x1024xf32> -> vector<8x1024xf32>
    %c0_5 = arith.constant 0 : index
    %c0_6 = arith.constant 0 : index
    %c0_7 = arith.constant 0 : index
    %7 = vector.load %arg4[%c0_5, %c0_6, %c0_7] : memref<1x1x1024xf32, #tpu.memory_space<vmem>>, vector<1x1x1024xf32>
    %8 = vector.shape_cast %7 : vector<1x1x1024xf32> to vector<1x1024xf32>
    %9 = vector.broadcast %8 : vector<1x1024xf32> to vector<8x1024xf32>
    %10 = arith.addf %6, %9 : vector<8x1024xf32>
    %cst_8 = arith.constant 0.000000e+00 : f32
    %11 = vector.broadcast %cst_8 : f32 to vector<8x1024xf32>
    %12 = arith.maximumf %10, %11 : vector<8x1024xf32>
    %c0_9 = arith.constant 0 : index
    %c0_10 = arith.constant 0 : index
    %c0_11 = arith.constant 0 : index
    %13 = vector.load %arg7[%c0_9, %c0_10, %c0_11] : memref<1x8x10xf32, #tpu.memory_space<vmem>>, vector<1x8x10xf32>
    %14 = vector.shape_cast %13 : vector<1x8x10xf32> to vector<8x10xf32>
    %15 = arith.truncf %12 : vector<8x1024xf32> to vector<8x1024xbf16>
    %c0_12 = arith.constant 0 : index
    %c0_13 = arith.constant 0 : index
    %c0_14 = arith.constant 0 : index
    %16 = vector.load %arg5[%c0_12, %c0_13, %c0_14] : memref<1x1024x10xbf16, #tpu.memory_space<vmem>>, vector<1x1024x10xbf16>
    %17 = vector.shape_cast %16 : vector<1x1024x10xbf16> to vector<1024x10xbf16>
    %cst_15 = arith.constant dense<0.000000e+00> : vector<8x10xf32>
    %18 = tpu.matmul %15, %17, %cst_15 {dimension_numbers = #tpu.dot_dimension_numbers<[1], [0], [0], [1], [0, 0, 1, 1], [], []>} : vector<8x1024xbf16>, vector<1024x10xbf16>, vector<8x10xf32> -> vector<8x10xf32>
    %19 = arith.addf %14, %18 : vector<8x10xf32>
    %c0_16 = arith.constant 0 : index
    %c0_17 = arith.constant 0 : index
    %c0_18 = arith.constant 0 : index
    %20 = vector.load %arg7[%c0_16, %c0_17, %c0_18] : memref<1x8x10xf32, #tpu.memory_space<vmem>>, vector<1x8x10xf32>
    %21 = vector.shape_cast %20 : vector<1x8x10xf32> to vector<8x10xf32>
    %22 = vector.shape_cast %19 : vector<8x10xf32> to vector<1x8x10xf32>
    tpu.vector_store %arg7[%c0_16, %c0_17, %c0_18], %22 {strides = array<i32>} : memref<1x8x10xf32, #tpu.memory_space<vmem>>, vector<1x8x10xf32>,
    %c0_i32_19 = arith.constant 0 : i32
    %23 = arith.cmpi eq, %arg1, %c0_i32_19 : i32
    %c0_i32_20 = arith.constant 0 : i32
    %24 = arith.cmpi eq, %arg0, %c0_i32_20 : i32
    %25 = arith.andi %23, %24 : i1
    %26 = arith.extui %25 : i1 to i32
    %c0_i32_21 = arith.constant 0 : i32
    %27 = arith.cmpi ne, %26, %c0_i32_21 : i32
    scf.if %27 {
      %c0_22 = arith.constant 0 : index
      %c0_23 = arith.constant 0 : index
      %c0_24 = arith.constant 0 : index
      %28 = vector.load %arg7[%c0_22, %c0_23, %c0_24] : memref<1x8x10xf32, #tpu.memory_space<vmem>>, vector<1x8x10xf32>
      %29 = vector.shape_cast %28 : vector<1x8x10xf32> to vector<8x10xf32>
      %c0_25 = arith.constant 0 : index
      %c0_26 = arith.constant 0 : index
      %30 = vector.load %arg6[%c0_25, %c0_26] : memref<1x10xf32, #tpu.memory_space<vmem>>, vector<1x10xf32>
      %31 = vector.broadcast %30 : vector<1x10xf32> to vector<8x10xf32>
      %32 = arith.addf %29, %31 : vector<8x10xf32>
      %c0_27 = arith.constant 0 : index
      %c0_28 = arith.constant 0 : index
      %c0_29 = arith.constant 0 : index
      %33 = vector.load %arg7[%c0_27, %c0_28, %c0_29] : memref<1x8x10xf32, #tpu.memory_space<vmem>>, vector<1x8x10xf32>
      %34 = vector.shape_cast %33 : vector<1x8x10xf32> to vector<8x10xf32>
      %35 = vector.shape_cast %32 : vector<8x10xf32> to vector<1x8x10xf32>
      tpu.vector_store %arg7[%c0_27, %c0_28, %c0_29], %35 {strides = array<i32>} : memref<1x8x10xf32, #tpu.memory_space<vmem>>, vector<1x8x10xf32>,
    } else {
    }
    return
  }
  func.func @transform_0(%arg0: i32, %arg1: i32) -> (i32, i32) {
    %c0_i32 = arith.constant 0 : i32
    %c0_i32_0 = arith.constant 0 : i32
    %c0_i32_1 = arith.constant 0 : i32
    return %c0_i32, %c0_i32_0 : i32, i32
  }
  func.func @transform_1(%arg0: i32, %arg1: i32) -> (i32, i32, i32) {
    %c1_i32 = arith.constant 1 : i32
    %0 = arith.muli %arg0, %c1_i32 : i32
    %1 = arith.addi %0, %arg1 : i32
    %c0_i32 = arith.constant 0 : i32
    %c0_i32_0 = arith.constant 0 : i32
    %c0_i32_1 = arith.constant 0 : i32
    return %1, %c0_i32, %c0_i32_0 : i32, i32, i32
  }
  func.func @transform_2(%arg0: i32, %arg1: i32) -> (i32, i32, i32) {
    %c1_i32 = arith.constant 1 : i32
    %0 = arith.muli %arg0, %c1_i32 : i32
    %1 = arith.addi %0, %arg1 : i32
    %c0_i32 = arith.constant 0 : i32
    %c0_i32_0 = arith.constant 0 : i32
    %c0_i32_1 = arith.constant 0 : i32
    return %1, %c0_i32, %c0_i32_0 : i32, i32, i32
  }
  func.func @transform_3(%arg0: i32, %arg1: i32) -> (i32, i32, i32) {
    %c1_i32 = arith.constant 1 : i32
    %0 = arith.muli %arg0, %c1_i32 : i32
    %1 = arith.addi %0, %arg1 : i32
    %c0_i32 = arith.constant 0 : i32
    %c0_i32_0 = arith.constant 0 : i32
    %c0_i32_1 = arith.constant 0 : i32
    return %1, %c0_i32, %c0_i32_0 : i32, i32, i32
  }
  func.func @transform_4(%arg0: i32, %arg1: i32) -> (i32, i32) {
    %c0_i32 = arith.constant 0 : i32
    %c0_i32_0 = arith.constant 0 : i32
    %c0_i32_1 = arith.constant 0 : i32
    return %c0_i32, %c0_i32_0 : i32, i32
  }
  func.func @transform_5(%arg0: i32, %arg1: i32) -> (i32, i32, i32) {
    %c0_i32 = arith.constant 0 : i32
    %c0_i32_0 = arith.constant 0 : i32
    %c0_i32_1 = arith.constant 0 : i32
    return %arg0, %c0_i32, %c0_i32_0 : i32, i32, i32
  }
}

</mosaic_0001>

<bundles_post_ra>
// kernel: wide_model_forward.1
= control target key start
LH: loop header
LB: loop body
LE: loop exit
PB: predicated region body
PF: predicated region fallthrough
CT: control target
= control target key end

     0   :  { %10 = vsyncpa [#allocation3], 0  ;;  %s3057_s0 = inlined_call_operand.vmem [shape: bf16[8,256], index: 0, kind: input, shape index: {}]   ;;  %s3058_s1 = inlined_call_operand.hbm [shape: bf16[1,256,1024], index: 1, kind: input, shape index: {}]   ;;  %s3059_s2 = inlined_call_operand.vmem [shape: f32[1,1,1024], index: 2, kind: input, shape index: {}]   ;;  %s3060_s3 = inlined_call_operand.vmem [shape: bf16[1,1024,10], index: 3, kind: input, shape index: {}]   ;;  %s3061_s4 = inlined_call_operand.vmem [shape: f32[1,10], index: 4, kind: input, shape index: {}]   ;;  %s3062_s5 = inlined_call_operand.hbm [shape: f32[1,8,10], index: 5, kind: output, shape index: {}]  }
   0x1   :  { %11 = vsyncpa [#allocation4], 0  ;;  %s22_s20 = sshll.u32 %s3058_s1, 4  ;;  %s2782_s21 = smov [#allocation2]   ;;  %s23_s20 = int_to_ptr.hbm [resolvable:$true] %s22_s20 }
   0x2   :  { %s24_s22 = sshll.u32 %s2782_s21, 4  ;;  %s2783_s23 = smov 512   ;;  %s25_s22 = int_to_ptr.vmem [resolvable:$true] %s24_s22 }
   0x3   :  { %s2784_s24 = smov 32  }
   0x4   :  { %30 = dma.hbm_to_vmem [thread:$0]  %s23_s20, 16384, %s25_s22, [#allocation3], %s2783_s23, %s2783_s23, %s2784_s24  }
   0x5   :  { %2778 = dma.done.wait [#allocation3], 16384  }
   0x6   :  { %2779 = vsyncadd [#allocation3], 4294950912  ;;  %v1990_v0 = vld [vmem:[#allocation2 + $0x1c0] sm:$0xf]  ;;  %v2588_v5 = vld [vmem:[#allocation2 + $0x1c4] sm:$0xf] }
   0x7   :  { %v2592_v1 = vld [vmem:[#allocation2 + $0x1dc] sm:$0xf0]  ;;  %v1992_v6 = vld [vmem:[#allocation2 + $0x1e0] sm:$0xf0]  ;;  %vm83_vm0 = vcmask 80896   ;;  %s2786_s20 = smov [#allocation5]  }
   0x8   :  { %v2246_v2 = vld [vmem:[#allocation2 + $0x3c0] sm:$0xf]  ;;  %v1991_v3 = vor.u32 %v2592_v1, %v1990_v0  ;;  %v1995_v8 = vor.u32 %v2588_v5, %v1992_v6  ;;  %v2652_v9 = vld [vmem:[#allocation2 + $0x3c4] sm:$0xf]  ;;  %s1740_s21 = sshll.u32 %s2786_s20, 4  ;;  %s1742_s24 = sshll.u32 %s3062_s5, 4  ;;  %s1741_s21 = int_to_ptr.vmem [resolvable:$true] %s1740_s21  ;;  %s1743_s24 = int_to_ptr.hbm [resolvable:$true] %s1742_s24 }
   0x9   :  { %v2656_v4 = vld [vmem:[#allocation2 + $0x3dc] sm:$0xf0]  ;;  %v2248_v10 = vld [vmem:[#allocation2 + $0x3e0] sm:$0xf0] }
   0xa   :  { %v2247_v7 = vor.u32 %v2656_v4, %v2246_v2  ;;  %v1958_v11 = vld [vmem:[#allocation2 + $0x180] sm:$0xf]  ;;  %879 = vmatpush.bf16.msra.mxu0 %v1991_v3  ;;  %v2251_v12 = vor.u32 %v2652_v9, %v2248_v10  ;;  %905 = vmatpush.bf16.msra.mxu2 %v1995_v8  ;;  %v2580_v18 = vld [vmem:[#allocation2 + $0x184] sm:$0xf] }
   0xb   :  { %v2584_v13 = vld [vmem:[#allocation2 + $0x19c] sm:$0xf0]  ;;  %v1960_v19 = vld [vmem:[#allocation2 + $0x1a0] sm:$0xf0] }
   0xc   :  { %v2214_v14 = vld [vmem:[#allocation2 + $0x380] sm:$0xf]  ;;  %892 = vmatpush.bf16.msra.mxu1 %v2247_v7  ;;  %v1959_v16 = vor.u32 %v2584_v13, %v1958_v11  ;;  %v2644_v20 = vld [vmem:[#allocation2 + $0x384] sm:$0xf]  ;;  %918 = vmatpush.bf16.msra.mxu3 %v2251_v12  ;;  %v1963_v21 = vor.u32 %v2580_v18, %v1960_v19 }
   0xd   :  { %v2648_v15 = vld [vmem:[#allocation2 + $0x39c] sm:$0xf0]  ;;  %v2216_v22 = vld [vmem:[#allocation2 + $0x3a0] sm:$0xf0] }
   0xe   :  { %v2215_v17 = vor.u32 %v2648_v15, %v2214_v14  ;;  %v1926_v23 = vld [vmem:[#allocation2 + $0x140] sm:$0xf]  ;;  %v2219_v25 = vor.u32 %v2644_v20, %v2216_v22  ;;  %v2572_v28 = vld [vmem:[#allocation2 + $0x144] sm:$0xf]  ;;  %880 = vmatpush.bf16.msra.mxu0 %v1959_v16  ;;  %906 = vmatpush.bf16.msra.mxu2 %v1963_v21 }
   0xf   :  { %v2576_v24 = vld [vmem:[#allocation2 + $0x15c] sm:$0xf0]  ;;  %v1928_v30 = vld [vmem:[#allocation2 + $0x160] sm:$0xf0] }
  0x10   :  { %v2182_v26 = vld [vmem:[#allocation2 + $0x340] sm:$0xf]  ;;  %v1927_v29 = vor.u32 %v2576_v24, %v1926_v23  ;;  %v2636_v31 = vld [vmem:[#allocation2 + $0x344] sm:$0xf]  ;;  %893 = vmatpush.bf16.msra.mxu1 %v2215_v17  ;;  %v1931_v34 = vor.u32 %v2572_v28, %v1928_v30  ;;  %919 = vmatpush.bf16.msra.mxu3 %v2219_v25  ;;  %v1998_v28 = vld [vmem:[#allocation2 + $0x1c8] sm:$0xf] }
  0x11   :  { %v2640_v27 = vld [vmem:[#allocation2 + $0x35c] sm:$0xf0]  ;;  %v2184_v32 = vld [vmem:[#allocation2 + $0x360] sm:$0xf0]  ;;  %v2254_v30 = vld [vmem:[#allocation2 + $0x3c8] sm:$0xf] }
  0x12   :  { %v2183_v33 = vor.u32 %v2640_v27, %v2182_v26  ;;  %v1894_v35 = vld [vmem:[#allocation2 + $0x100] sm:$0xf]  ;;  %v2187_v38 = vor.u32 %v2636_v31, %v2184_v32  ;;  %v2564_v40 = vld [vmem:[#allocation2 + $0x104] sm:$0xf]  ;;  %881 = vmatpush.bf16.msra.mxu0 %v1927_v29  ;;  %907 = vmatpush.bf16.msra.mxu2 %v1931_v34  ;;  %v2593_v29 = vld [vmem:[#allocation2 + $0x1e4] sm:$0xf0] }
  0x13   :  { %v2568_v36 = vld [vmem:[#allocation2 + $0x11c] sm:$0xf0]  ;;  %v1896_v41 = vld [vmem:[#allocation2 + $0x120] sm:$0xf0]  ;;  %v2657_v32 = vld [vmem:[#allocation2 + $0x3e4] sm:$0xf0] }
  0x14   :  { %v2150_v37 = vld [vmem:[#allocation2 + $0x300] sm:$0xf]  ;;  %v2628_v42 = vld [vmem:[#allocation2 + $0x304] sm:$0xf]  ;;  %v1895_v44 = vor.u32 %v2568_v36, %v1894_v35  ;;  %894 = vmatpush.bf16.msra.mxu1 %v2183_v33  ;;  %v1899_v46 = vor.u32 %v2564_v40, %v1896_v41  ;;  %920 = vmatpush.bf16.msra.mxu3 %v2187_v38  ;;  %v2589_v33 = vld [vmem:[#allocation2 + $0x1cc] sm:$0xf]  ;;  %v1999_v40 = vor.u32 %v2593_v29, %v1998_v28 }
  0x15   :  { %v2632_v39 = vld [vmem:[#allocation2 + $0x31c] sm:$0xf0]  ;;  %v2152_v43 = vld [vmem:[#allocation2 + $0x320] sm:$0xf0]  ;;  %v2000_v34 = vld [vmem:[#allocation2 + $0x1e8] sm:$0xf0]  ;;  %v2255_v41 = vor.u32 %v2657_v32, %v2254_v30 }
  0x16   :  { %v2151_v45 = vor.u32 %v2632_v39, %v2150_v37  ;;  %v1862_v47 = vld [vmem:[#allocation2 + $0xc0] sm:$0xf]  ;;  %v2155_v50 = vor.u32 %v2628_v42, %v2152_v43  ;;  %v2556_v52 = vld [vmem:[#allocation2 + $0xc4] sm:$0xf]  ;;  %882 = vmatpush.bf16.msra.mxu0 %v1895_v44  ;;  %908 = vmatpush.bf16.msra.mxu2 %v1899_v46  ;;  %v2653_v37 = vld [vmem:[#allocation2 + $0x3cc] sm:$0xf]  ;;  %v2003_v42 = vor.u32 %v2589_v33, %v2000_v34 }
  0x17   :  { %v2560_v48 = vld [vmem:[#allocation2 + $0xdc] sm:$0xf0]  ;;  %v1864_v53 = vld [vmem:[#allocation2 + $0xe0] sm:$0xf0]  ;;  %v2256_v38 = vld [vmem:[#allocation2 + $0x3e8] sm:$0xf0] }
  0x18   :  { %v2118_v49 = vld [vmem:[#allocation2 + $0x2c0] sm:$0xf]  ;;  %v2620_v54 = vld [vmem:[#allocation2 + $0x2c4] sm:$0xf]  ;;  %v1863_v56 = vor.u32 %v2560_v48, %v1862_v47  ;;  %895 = vmatpush.bf16.msra.mxu1 %v2151_v45  ;;  %v1867_v58 = vor.u32 %v2556_v52, %v1864_v53  ;;  %921 = vmatpush.bf16.msra.mxu3 %v2155_v50  ;;  %v1966_v43 = vld [vmem:[#allocation2 + $0x188] sm:$0xf]  ;;  %v2259_v46 = vor.u32 %v2653_v37, %v2256_v38 }
  0x19   :  { %v2624_v51 = vld [vmem:[#allocation2 + $0x2dc] sm:$0xf0]  ;;  %v2120_v55 = vld [vmem:[#allocation2 + $0x2e0] sm:$0xf0]  ;;  %v2585_v44 = vld [vmem:[#allocation2 + $0x1a4] sm:$0xf0] }
  0x1a   :  { %v2119_v57 = vor.u32 %v2624_v51, %v2118_v49  ;;  %v1830_v59 = vld [vmem:[#allocation2 + $0x80] sm:$0xf]  ;;  %v2123_v62 = vor.u32 %v2620_v54, %v2120_v55  ;;  %v2548_v0 = vld [vmem:[#allocation2 + $0x84] sm:$0xf]  ;;  %883 = vmatpush.bf16.msra.mxu0 %v1863_v56  ;;  %909 = vmatpush.bf16.msra.mxu2 %v1867_v58  ;;  %v2222_v45 = vld [vmem:[#allocation2 + $0x388] sm:$0xf]  ;;  %v1967_v53 = vor.u32 %v2585_v44, %v1966_v43 }
  0x1b   :  { %v2552_v60 = vld [vmem:[#allocation2 + $0x9c] sm:$0xf0]  ;;  %v1832_v1 = vld [vmem:[#allocation2 + $0xa0] sm:$0xf0]  ;;  %v2649_v47 = vld [vmem:[#allocation2 + $0x3a4] sm:$0xf0] }
  0x1c   :  { %v2086_v61 = vld [vmem:[#allocation2 + $0x280] sm:$0xf]  ;;  %v2612_v2 = vld [vmem:[#allocation2 + $0x284] sm:$0xf]  ;;  %v1831_v4 = vor.u32 %v2552_v60, %v1830_v59  ;;  %896 = vmatpush.bf16.msra.mxu1 %v2119_v57  ;;  %v1835_v6 = vor.u32 %v2548_v0, %v1832_v1  ;;  %922 = vmatpush.bf16.msra.mxu3 %v2123_v62  ;;  %v2581_v48 = vld [vmem:[#allocation2 + $0x18c] sm:$0xf]  ;;  %v2223_v56 = vor.u32 %v2649_v47, %v2222_v45 }
  0x1d   :  { %v2616_v63 = vld [vmem:[#allocation2 + $0x29c] sm:$0xf0]  ;;  %v2088_v3 = vld [vmem:[#allocation2 + $0x2a0] sm:$0xf0]  ;;  %v1968_v49 = vld [vmem:[#allocation2 + $0x1a8] sm:$0xf0] }
  0x1e   :  { %v2087_v5 = vor.u32 %v2616_v63, %v2086_v61  ;;  %v1798_v7 = vld [vmem:[#allocation2 + $0x40] sm:$0xf]  ;;  %v2091_v10 = vor.u32 %v2612_v2, %v2088_v3  ;;  %v2540_v12 = vld [vmem:[#allocation2 + $0x44] sm:$0xf]  ;;  %884 = vmatpush.bf16.msra.mxu0 %v1831_v4  ;;  %910 = vmatpush.bf16.msra.mxu2 %v1835_v6  ;;  %v2645_v50 = vld [vmem:[#allocation2 + $0x38c] sm:$0xf]  ;;  %v1971_v57 = vor.u32 %v2581_v48, %v1968_v49 }
  0x1f   :  { %v2544_v8 = vld [vmem:[#allocation2 + $0x5c] sm:$0xf0]  ;;  %v1800_v13 = vld [vmem:[#allocation2 + $0x60] sm:$0xf0]  ;;  %v2224_v51 = vld [vmem:[#allocation2 + $0x3a8] sm:$0xf0] }
  0x20   :  { %v2054_v9 = vld [vmem:[#allocation2 + $0x240] sm:$0xf]  ;;  %v2604_v14 = vld [vmem:[#allocation2 + $0x244] sm:$0xf]  ;;  %v1799_v16 = vor.u32 %v2544_v8, %v1798_v7  ;;  %897 = vmatpush.bf16.msra.mxu1 %v2087_v5  ;;  %v1803_v20 = vor.u32 %v2540_v12, %v1800_v13  ;;  %923 = vmatpush.bf16.msra.mxu3 %v2091_v10  ;;  %v1934_v58 = vld [vmem:[#allocation2 + $0x148] sm:$0xf]  ;;  %v2227_v61 = vor.u32 %v2645_v50, %v2224_v51 }
  0x21   :  { %v2608_v11 = vld [vmem:[#allocation2 + $0x25c] sm:$0xf0]  ;;  %v2056_v15 = vld [vmem:[#allocation2 + $0x260] sm:$0xf0]  ;;  %v2577_v59 = vld [vmem:[#allocation2 + $0x164] sm:$0xf0] }
  0x22   :  { %v1766_v17 = vld [vmem:[#allocation2] sm:$0xf]  ;;  %v2055_v19 = vor.u32 %v2608_v11, %v2054_v9  ;;  %v2532_v23 = vld [vmem:[#allocation2 + $0x4] sm:$0xf]  ;;  %v2059_v24 = vor.u32 %v2604_v14, %v2056_v15  ;;  %885 = vmatpush.bf16.msra.mxu0 %v1799_v16  ;;  %911 = vmatpush.bf16.msra.mxu2 %v1803_v20  ;;  %v2190_v60 = vld [vmem:[#allocation2 + $0x348] sm:$0xf]  ;;  %v1935_v5 = vor.u32 %v2577_v59, %v1934_v58 }
  0x23   :  { %v2536_v18 = vld [vmem:[#allocation2 + $0x1c] sm:$0xf0]  ;;  %v1768_v25 = vld [vmem:[#allocation2 + $0x20] sm:$0xf0]  ;;  %v2641_v62 = vld [vmem:[#allocation2 + $0x364] sm:$0xf0] }
  0x24   :  { %v2022_v21 = vld [vmem:[#allocation2 + $0x200] sm:$0xf]  ;;  %v2596_v26 = vld [vmem:[#allocation2 + $0x204] sm:$0xf]  ;;  %v1767_v31 = vor.u32 %v2536_v18, %v1766_v17  ;;  %898 = vmatpush.bf16.msra.mxu1 %v2055_v19  ;;  %v1771_v36 = vor.u32 %v2532_v23, %v1768_v25  ;;  %924 = vmatpush.bf16.msra.mxu3 %v2059_v24  ;;  %v2573_v63 = vld [vmem:[#allocation2 + $0x14c] sm:$0xf]  ;;  %v2191_v6 = vor.u32 %v2641_v62, %v2190_v60 }
  0x25   :  { %v2600_v22 = vld [vmem:[#allocation2 + $0x21c] sm:$0xf0]  ;;  %v2024_v27 = vld [vmem:[#allocation2 + $0x220] sm:$0xf0]  ;;  %v1936_v0 = vld [vmem:[#allocation2 + $0x168] sm:$0xf0] }
  0x26   :  { %v2023_v35 = vor.u32 %v2600_v22, %v2022_v21  ;;  %v2027_v39 = vor.u32 %v2596_v26, %v2024_v27  ;;  %886 = vmatpush.bf16.msra.mxu0 %v1767_v31  ;;  %912 = vmatpush.bf16.msra.mxu2 %v1771_v36  ;;  %v85_v52 = vld [vmem:[%s3057_s0] sm:$0xff]  ;;  %v2637_v2 = vld [vmem:[#allocation2 + $0x34c] sm:$0xf]  ;;  %v1939_v7 = vor.u32 %v2573_v63, %v1936_v0  ;;  %v1902_v8 = vld [vmem:[#allocation2 + $0x108] sm:$0xf] }
  0x27   :  { %v233_v54 = vunpack.c.l.b16 %v85_v52  ;;  %v234_v55 = vunpack.c.h.b16 %v85_v52  ;;  %v2192_v3 = vld [vmem:[#allocation2 + $0x368] sm:$0xf0]  ;;  %v2569_v9 = vld [vmem:[#allocation2 + $0x124] sm:$0xf0] }
  0x28   :  { %899 = vmatpush.bf16.msra.mxu1 %v2023_v35  ;;  %925 = vmatpush.bf16.msra.mxu3 %v2027_v39  ;;  %v2158_v10 = vld [vmem:[#allocation2 + $0x308] sm:$0xf]  ;;  %v2195_v11 = vor.u32 %v2637_v2, %v2192_v3  ;;  %v2565_v13 = vld [vmem:[#allocation2 + $0x10c] sm:$0xf]  ;;  %v1903_v17 = vor.u32 %v2569_v9, %v1902_v8  ;;  %v2006_v2 = vld [vmem:[#allocation2 + $0x1d0] sm:$0xf] }
  0x29   :  { %v2823_v1 = vpack.c.b16 %v233_v54, %v233_v54  ;;  %v2825_v4 = vpack.c.b16 %v234_v55, %v234_v55  ;;  %v2633_v12 = vld [vmem:[#allocation2 + $0x324] sm:$0xf0]  ;;  %v1904_v14 = vld [vmem:[#allocation2 + $0x128] sm:$0xf0]  ;;  %v2594_v3 = vld [vmem:[#allocation2 + $0x1ec] sm:$0xf0] }
  0x2a   :  { %931 = vmatpush.bf16.msrb.mxu0 %v1999_v40  ;;  %957 = vmatpush.bf16.msrb.mxu2 %v2003_v42  ;;  %v2629_v15 = vld [vmem:[#allocation2 + $0x30c] sm:$0xf]  ;;  %v2159_v18 = vor.u32 %v2633_v12, %v2158_v10  ;;  %v1907_v19 = vor.u32 %v2565_v13, %v1904_v14  ;;  %v1870_v20 = vld [vmem:[#allocation2 + $0xc8] sm:$0xf]  ;;  %v2590_v8 = vld [vmem:[#allocation2 + $0x1d4] sm:$0xf] }
  0x2b   :  { %913 = vmatmul.bf16.vlgmr.msra.gmra.mxu2 %v2823_v1  ;;  %887 = vmatmul.bf16.vlgmr.msra.gmra.mxu0 %v2823_v1  ;;  %v2160_v16 = vld [vmem:[#allocation2 + $0x328] sm:$0xf0]  ;;  %v2561_v21 = vld [vmem:[#allocation2 + $0xe4] sm:$0xf0]  ;;  %v2008_v9 = vld [vmem:[#allocation2 + $0x1f0] sm:$0xf0] }
  0x2c   :  { %944 = vmatpush.bf16.msrb.mxu1 %v2255_v41  ;;  %970 = vmatpush.bf16.msrb.mxu3 %v2259_v46  ;;  %v2126_v22 = vld [vmem:[#allocation2 + $0x2c8] sm:$0xf]  ;;  %v2163_v23 = vor.u32 %v2629_v15, %v2160_v16  ;;  %v2557_v25 = vld [vmem:[#allocation2 + $0xcc] sm:$0xf]  ;;  %v1871_v29 = vor.u32 %v2561_v21, %v1870_v20  ;;  %v2654_v12 = vld [vmem:[#allocation2 + $0x3d4] sm:$0xf]  ;;  %v2007_v15 = vor.u32 %v2594_v3, %v2006_v2 }
  0x2d   :  { %900 = vmatmul.bf16.vlgmr.msra.gmra.mxu1 %v2825_v4  ;;  %926 = vmatmul.bf16.vlgmr.msra.gmra.mxu3 %v2825_v4  ;;  %v2625_v24 = vld [vmem:[#allocation2 + $0x2e4] sm:$0xf0]  ;;  %v1872_v26 = vld [vmem:[#allocation2 + $0xe8] sm:$0xf0]  ;;  %v2264_v13 = vld [vmem:[#allocation2 + $0x3f0] sm:$0xf0] }
  0x2e   :  { %932 = vmatpush.bf16.msrb.mxu0 %v1967_v53  ;;  %958 = vmatpush.bf16.msrb.mxu2 %v1971_v57  ;;  %v2621_v27 = vld [vmem:[#allocation2 + $0x2cc] sm:$0xf]  ;;  %v2127_v30 = vor.u32 %v2625_v24, %v2126_v22  ;;  %v1875_v31 = vor.u32 %v2557_v25, %v1872_v26  ;;  %v1838_v32 = vld [vmem:[#allocation2 + $0x88] sm:$0xf]  ;;  %v2230_v20 = vld [vmem:[#allocation2 + $0x390] sm:$0xf]  ;;  %v2267_v21 = vor.u32 %v2654_v12, %v2264_v13 }
  0x2f   :  { %v2128_v28 = vld [vmem:[#allocation2 + $0x2e8] sm:$0xf0]  ;;  %v2553_v33 = vld [vmem:[#allocation2 + $0xa4] sm:$0xf0]  ;;  %v2650_v22 = vld [vmem:[#allocation2 + $0x3ac] sm:$0xf0] }
  0x30   :  { %945 = vmatpush.bf16.msrb.mxu1 %v2223_v56  ;;  %971 = vmatpush.bf16.msrb.mxu3 %v2227_v61  ;;  %v2094_v34 = vld [vmem:[#allocation2 + $0x288] sm:$0xf]  ;;  %v2131_v35 = vor.u32 %v2621_v27, %v2128_v28  ;;  %v2549_v37 = vld [vmem:[#allocation2 + $0x8c] sm:$0xf]  ;;  %v1839_v41 = vor.u32 %v2553_v33, %v1838_v32  ;;  %v1976_v24 = vld [vmem:[#allocation2 + $0x1b0] sm:$0xf0]  ;;  %v2231_v28 = vor.u32 %v2650_v22, %v2230_v20 }
  0x31   :  { %v2617_v36 = vld [vmem:[#allocation2 + $0x2a4] sm:$0xf0]  ;;  %v1840_v38 = vld [vmem:[#allocation2 + $0xa8] sm:$0xf0]  ;;  %v2646_v25 = vld [vmem:[#allocation2 + $0x394] sm:$0xf] }
  0x32   :  { %933 = vmatpush.bf16.msrb.mxu0 %v1935_v5  ;;  %959 = vmatpush.bf16.msrb.mxu2 %v1939_v7  ;;  %v2613_v39 = vld [vmem:[#allocation2 + $0x28c] sm:$0xf]  ;;  %v2095_v42 = vor.u32 %v2617_v36, %v2094_v34  ;;  %v1843_v43 = vor.u32 %v2549_v37, %v1840_v38  ;;  %v1806_v44 = vld [vmem:[#allocation2 + $0x48] sm:$0xf]  ;;  %v2262_v5 = vld [vmem:[#allocation2 + $0x3d0] sm:$0xf] }
  0x33   :  { %v2096_v40 = vld [vmem:[#allocation2 + $0x2a8] sm:$0xf0]  ;;  %v2545_v45 = vld [vmem:[#allocation2 + $0x64] sm:$0xf0]  ;;  %v2658_v7 = vld [vmem:[#allocation2 + $0x3ec] sm:$0xf0] }
  0x34   :  { %946 = vmatpush.bf16.msrb.mxu1 %v2191_v6  ;;  %972 = vmatpush.bf16.msrb.mxu3 %v2195_v11  ;;  %v2062_v46 = vld [vmem:[#allocation2 + $0x248] sm:$0xf]  ;;  %v2099_v47 = vor.u32 %v2613_v39, %v2096_v40  ;;  %v2541_v49 = vld [vmem:[#allocation2 + $0x4c] sm:$0xf]  ;;  %v1807_v53 = vor.u32 %v2545_v45, %v1806_v44  ;;  %v2263_v16 = vor.u32 %v2658_v7, %v2262_v5  ;;  %v2232_v26 = vld [vmem:[#allocation2 + $0x3b0] sm:$0xf0] }
  0x35   :  { %v2609_v48 = vld [vmem:[#allocation2 + $0x264] sm:$0xf0]  ;;  %v1808_v50 = vld [vmem:[#allocation2 + $0x68] sm:$0xf0]  ;;  %v2198_v32 = vld [vmem:[#allocation2 + $0x350] sm:$0xf]  ;;  %v2235_v33 = vor.u32 %v2646_v25, %v2232_v26 }
  0x36   :  { %934 = vmatpush.bf16.msrb.mxu0 %v1903_v17  ;;  %960 = vmatpush.bf16.msrb.mxu2 %v1907_v19  ;;  %v2605_v51 = vld [vmem:[#allocation2 + $0x24c] sm:$0xf]  ;;  %v1774_v54 = vld [vmem:[#allocation2 + $0x8] sm:$0xf]  ;;  %v2063_v56 = vor.u32 %v2609_v48, %v2062_v46  ;;  %v1811_v57 = vor.u32 %v2541_v49, %v1808_v50  ;;  %v2011_v17 = vor.u32 %v2590_v8, %v2008_v9  ;;  %v2586_v19 = vld [vmem:[#allocation2 + $0x1ac] sm:$0xf0] }
  0x37   :  { %v2064_v52 = vld [vmem:[#allocation2 + $0x268] sm:$0xf0]  ;;  %v2537_v55 = vld [vmem:[#allocation2 + $0x24] sm:$0xf0]  ;;  %v2642_v34 = vld [vmem:[#allocation2 + $0x36c] sm:$0xf0] }
  0x38   :  { %947 = vmatpush.bf16.msrb.mxu1 %v2159_v18  ;;  %973 = vmatpush.bf16.msrb.mxu3 %v2163_v23  ;;  %v2030_v58 = vld [vmem:[#allocation2 + $0x208] sm:$0xf]  ;;  %v2533_v60 = vld [vmem:[#allocation2 + $0xc] sm:$0xf]  ;;  %v2067_v61 = vor.u32 %v2605_v51, %v2064_v52  ;;  %v1775_v6 = vor.u32 %v2537_v55, %v1774_v54  ;;  %v1974_v18 = vld [vmem:[#allocation2 + $0x190] sm:$0xf]  ;;  %v2199_v40 = vor.u32 %v2642_v34, %v2198_v32 }
  0x39   :  { %v2601_v59 = vld [vmem:[#allocation2 + $0x224] sm:$0xf0]  ;;  %v1776_v62 = vld [vmem:[#allocation2 + $0x28] sm:$0xf0]  ;;  %v2582_v23 = vld [vmem:[#allocation2 + $0x194] sm:$0xf]  ;;  %v1975_v27 = vor.u32 %v2586_v19, %v1974_v18 }
  0x3a   :  { %935 = vmatpush.bf16.msrb.mxu0 %v1871_v29  ;;  %961 = vmatpush.bf16.msrb.mxu2 %v1875_v31  ;;  %v2597_v63 = vld [vmem:[#allocation2 + $0x20c] sm:$0xf]  ;;  %v2031_v10 = vor.u32 %v2601_v59, %v2030_v58  ;;  %v1779_v11 = vor.u32 %v2533_v60, %v1776_v62  ;;  %v1979_v29 = vor.u32 %v2582_v23, %v1976_v24  ;;  %v2578_v31 = vld [vmem:[#allocation2 + $0x16c] sm:$0xf0]  ;;  %v1944_v36 = vld [vmem:[#allocation2 + $0x170] sm:$0xf0] }
  0x3b   :  { %v2032_v0 = vld [vmem:[#allocation2 + $0x228] sm:$0xf0]  ;;  %v2638_v37 = vld [vmem:[#allocation2 + $0x354] sm:$0xf]  ;;  %v2166_v44 = vld [vmem:[#allocation2 + $0x310] sm:$0xf] }
  0x3c   :  { %948 = vmatpush.bf16.msrb.mxu1 %v2127_v30  ;;  %974 = vmatpush.bf16.msrb.mxu3 %v2131_v35  ;;  %v2035_v14 = vor.u32 %v2597_v63, %v2032_v0  ;;  %v1942_v30 = vld [vmem:[#allocation2 + $0x150] sm:$0xf]  ;;  %v2574_v35 = vld [vmem:[#allocation2 + $0x154] sm:$0xf] }
  0x3d   :  { %v2200_v38 = vld [vmem:[#allocation2 + $0x370] sm:$0xf0]  ;;  %v1943_v39 = vor.u32 %v2578_v31, %v1942_v30  ;;  %v2634_v46 = vld [vmem:[#allocation2 + $0x32c] sm:$0xf0] }
  0x3e   :  { %936 = vmatpush.bf16.msrb.mxu0 %v1839_v41  ;;  %962 = vmatpush.bf16.msrb.mxu2 %v1843_v43  ;;  %v1947_v41 = vor.u32 %v2574_v35, %v1944_v36  ;;  %v2570_v43 = vld [vmem:[#allocation2 + $0x12c] sm:$0xf0]  ;;  %v2203_v45 = vor.u32 %v2638_v37, %v2200_v38  ;;  %v1912_v48 = vld [vmem:[#allocation2 + $0x130] sm:$0xf0]  ;;  %v2167_v52 = vor.u32 %v2634_v46, %v2166_v44  ;;  %v2014_v37 = vld [vmem:[#allocation2 + $0x1d8] sm:$0xf] }
  0x3f   :  { %v2630_v49 = vld [vmem:[#allocation2 + $0x314] sm:$0xf]  ;;  %v1878_v54 = vld [vmem:[#allocation2 + $0xd0] sm:$0xf]  ;;  %v2595_v38 = vld [vmem:[#allocation2 + $0x1f4] sm:$0xf0] }
  0x40   :  { %949 = vmatpush.bf16.msrb.mxu1 %v2095_v42  ;;  %975 = vmatpush.bf16.msrb.mxu3 %v2099_v47  ;;  %v1910_v42 = vld [vmem:[#allocation2 + $0x110] sm:$0xf]  ;;  %v2566_v47 = vld [vmem:[#allocation2 + $0x114] sm:$0xf]  ;;  %v2655_v46 = vld [vmem:[#allocation2 + $0x3dc] sm:$0xf] }
  0x41   :  { %v2168_v50 = vld [vmem:[#allocation2 + $0x330] sm:$0xf0]  ;;  %v1911_v51 = vor.u32 %v2570_v43, %v1910_v42  ;;  %v2562_v55 = vld [vmem:[#allocation2 + $0xec] sm:$0xf0]  ;;  %v2591_v42 = vld [vmem:[#allocation2 + $0x1dc] sm:$0xf] }
  0x42   :  { %937 = vmatpush.bf16.msrb.mxu0 %v1807_v53  ;;  %963 = vmatpush.bf16.msrb.mxu2 %v1811_v57  ;;  %v1915_v53 = vor.u32 %v2566_v47, %v1912_v48  ;;  %v2171_v57 = vor.u32 %v2630_v49, %v2168_v50  ;;  %v2626_v58 = vld [vmem:[#allocation2 + $0x2ec] sm:$0xf0]  ;;  %v2558_v59 = vld [vmem:[#allocation2 + $0xd4] sm:$0xf]  ;;  %v1879_v63 = vor.u32 %v2562_v55, %v1878_v54  ;;  %v2016_v43 = vld [vmem:[#allocation2 + $0x1f8] sm:$0xf0] }
  0x43   :  { %v1880_v60 = vld [vmem:[#allocation2 + $0xf0] sm:$0xf0]  ;;  %v1846_v3 = vld [vmem:[#allocation2 + $0x90] sm:$0xf]  ;;  %v2272_v47 = vld [vmem:[#allocation2 + $0x3f8] sm:$0xf0]  ;;  %v2015_v49 = vor.u32 %v2595_v38, %v2014_v37 }
  0x44   :  { %950 = vmatpush.bf16.msrb.mxu1 %v2063_v56  ;;  %976 = vmatpush.bf16.msrb.mxu3 %v2067_v61  ;;  %v2134_v56 = vld [vmem:[#allocation2 + $0x2d0] sm:$0xf]  ;;  %v2622_v61 = vld [vmem:[#allocation2 + $0x2d4] sm:$0xf]  ;;  %v1883_v2 = vor.u32 %v2558_v59, %v1880_v60  ;;  %v2238_v54 = vld [vmem:[#allocation2 + $0x398] sm:$0xf]  ;;  %v2275_v55 = vor.u32 %v2655_v46, %v2272_v47 }
  0x45   :  { %v2136_v62 = vld [vmem:[#allocation2 + $0x2f0] sm:$0xf0]  ;;  %v2135_v0 = vor.u32 %v2626_v58, %v2134_v56  ;;  %v2554_v5 = vld [vmem:[#allocation2 + $0xac] sm:$0xf0]  ;;  %v2651_v56 = vld [vmem:[#allocation2 + $0x3b4] sm:$0xf0] }
  0x46   :  { %938 = vmatpush.bf16.msrb.mxu0 %v1775_v6  ;;  %964 = vmatpush.bf16.msrb.mxu2 %v1779_v11  ;;  %v2102_v6 = vld [vmem:[#allocation2 + $0x290] sm:$0xf]  ;;  %v2139_v7 = vor.u32 %v2622_v61, %v2136_v62  ;;  %v2550_v9 = vld [vmem:[#allocation2 + $0x94] sm:$0xf]  ;;  %v1847_v13 = vor.u32 %v2554_v5, %v1846_v3  ;;  %v1984_v58 = vld [vmem:[#allocation2 + $0x1b8] sm:$0xf0]  ;;  %v2239_v62 = vor.u32 %v2651_v56, %v2238_v54 }
  0x47   :  { %v2618_v8 = vld [vmem:[#allocation2 + $0x2ac] sm:$0xf0]  ;;  %v2614_v11 = vld [vmem:[#allocation2 + $0x294] sm:$0xf]  ;;  %v2647_v59 = vld [vmem:[#allocation2 + $0x39c] sm:$0xf] }
  0x48   :  { %951 = vmatpush.bf16.msrb.mxu1 %v2031_v10  ;;  %977 = vmatpush.bf16.msrb.mxu3 %v2035_v14  ;;  %v1848_v10 = vld [vmem:[#allocation2 + $0xb0] sm:$0xf0]  ;;  %v2103_v14 = vor.u32 %v2618_v8, %v2102_v6  ;;  %v2070_v18 = vld [vmem:[#allocation2 + $0x250] sm:$0xf]  ;;  %v2240_v60 = vld [vmem:[#allocation2 + $0x3b8] sm:$0xf0] }
  0x49   :  { %939 = vmatmul.bf16.vlgmr.msrb.gmra.mxu0 %v2823_v1  ;;  %965 = vmatmul.bf16.vlgmr.msrb.gmra.mxu2 %v2823_v1  ;;  %v2104_v12 = vld [vmem:[#allocation2 + $0x2b0] sm:$0xf0]  ;;  %v2610_v20 = vld [vmem:[#allocation2 + $0x26c] sm:$0xf0]  ;;  %v2206_v3 = vld [vmem:[#allocation2 + $0x358] sm:$0xf]  ;;  %v2243_v5 = vor.u32 %v2647_v59, %v2240_v60 }
  0x4a   :  { %983 = vmatpush.bf16.msra.mxu0 %v2007_v15  ;;  %1009 = vmatpush.bf16.msra.mxu2 %v2011_v17  ;;  %v1851_v15 = vor.u32 %v2550_v9, %v1848_v10  ;;  %v2546_v17 = vld [vmem:[#allocation2 + $0x6c] sm:$0xf0]  ;;  %v2107_v19 = vor.u32 %v2614_v11, %v2104_v12  ;;  %v1816_v22 = vld [vmem:[#allocation2 + $0x70] sm:$0xf0]  ;;  %v2643_v6 = vld [vmem:[#allocation2 + $0x374] sm:$0xf0] }
  0x4b   :  { %952 = vmatmul.bf16.vlgmr.msrb.gmra.mxu1 %v2825_v4  ;;  %978 = vmatmul.bf16.vlgmr.msrb.gmra.mxu3 %v2825_v4  ;;  %v2606_v23 = vld [vmem:[#allocation2 + $0x254] sm:$0xf]  ;;  %v1782_v26 = vld [vmem:[#allocation2 + $0x10] sm:$0xf]  ;;  %v1952_v8 = vld [vmem:[#allocation2 + $0x178] sm:$0xf0]  ;;  %v2207_v12 = vor.u32 %v2643_v6, %v2206_v3 }
  0x4c   :  { %996 = vmatpush.bf16.msra.mxu1 %v2263_v16  ;;  %1022 = vmatpush.bf16.msra.mxu3 %v2267_v21  ;;  %v1814_v16 = vld [vmem:[#allocation2 + $0x50] sm:$0xf]  ;;  %v2542_v21 = vld [vmem:[#allocation2 + $0x54] sm:$0xf]  ;;  %v2639_v9 = vld [vmem:[#allocation2 + $0x35c] sm:$0xf] }
  0x4d   :  { %v2072_v24 = vld [vmem:[#allocation2 + $0x270] sm:$0xf0]  ;;  %v1815_v25 = vor.u32 %v2546_v17, %v1814_v16  ;;  %v2038_v30 = vld [vmem:[#allocation2 + $0x210] sm:$0xf]  ;;  %v2208_v10 = vld [vmem:[#allocation2 + $0x378] sm:$0xf0] }
  0x4e   :  { %984 = vmatpush.bf16.msra.mxu0 %v1975_v27  ;;  %1010 = vmatpush.bf16.msra.mxu2 %v1979_v29  ;;  %v2538_v27 = vld [vmem:[#allocation2 + $0x2c] sm:$0xf0]  ;;  %v1819_v29 = vor.u32 %v2542_v21, %v1816_v22  ;;  %v2534_v32 = vld [vmem:[#allocation2 + $0x14] sm:$0xf]  ;;  %v2174_v16 = vld [vmem:[#allocation2 + $0x318] sm:$0xf]  ;;  %v2211_v17 = vor.u32 %v2639_v9, %v2208_v10 }
  0x4f   :  { %v2602_v31 = vld [vmem:[#allocation2 + $0x22c] sm:$0xf0]  ;;  %v1784_v34 = vld [vmem:[#allocation2 + $0x30] sm:$0xf0]  ;;  %v2631_v21 = vld [vmem:[#allocation2 + $0x31c] sm:$0xf] }
  0x50   :  { %997 = vmatpush.bf16.msra.mxu1 %v2231_v28  ;;  %1023 = vmatpush.bf16.msra.mxu3 %v2235_v33  ;;  %v2071_v28 = vor.u32 %v2610_v20, %v2070_v18  ;;  %v2075_v33 = vor.u32 %v2606_v23, %v2072_v24  ;;  %v2598_v35 = vld [vmem:[#allocation2 + $0x214] sm:$0xf]  ;;  %v2039_v44 = vor.u32 %v2602_v31, %v2038_v30  ;;  %v2635_v18 = vld [vmem:[#allocation2 + $0x334] sm:$0xf0]  ;;  %v1920_v20 = vld [vmem:[#allocation2 + $0x138] sm:$0xf0] }
  0x51   :  { %v2040_v36 = vld [vmem:[#allocation2 + $0x230] sm:$0xf0]  ;;  %v2176_v22 = vld [vmem:[#allocation2 + $0x338] sm:$0xf0]  ;;  %v2175_v24 = vor.u32 %v2635_v18, %v2174_v16  ;;  %v2627_v30 = vld [vmem:[#allocation2 + $0x2f4] sm:$0xf0] }
  0x52   :  { %985 = vmatpush.bf16.msra.mxu0 %v1943_v39  ;;  %1011 = vmatpush.bf16.msra.mxu2 %v1947_v41  ;;  %v2270_v39 = vld [vmem:[#allocation2 + $0x3d8] sm:$0xf]  ;;  %v2043_v48 = vor.u32 %v2598_v35, %v2040_v36  ;;  %v2559_v31 = vld [vmem:[#allocation2 + $0xdc] sm:$0xf]  ;;  %v2666_v16 = vld [vmem:[%s3060_s3 + $0x30] sm:$0xff] }
  0x53   :  { %v2659_v41 = vld [vmem:[#allocation2 + $0x3f4] sm:$0xf0]  ;;  %v2112_v46 = vld [vmem:[#allocation2 + $0x2b8] sm:$0xf0]  ;;  %v2682_v18 = vld [vmem:[%s3060_s3 + $0xb0] sm:$0xff] }
  0x54   :  { %998 = vmatpush.bf16.msra.mxu1 %v2199_v40  ;;  %1024 = vmatpush.bf16.msra.mxu3 %v2203_v45  ;;  %v1783_v40 = vor.u32 %v2538_v27, %v1782_v26  ;;  %v1787_v45 = vor.u32 %v2534_v32, %v1784_v34  ;;  %v2271_v50 = vor.u32 %v2659_v41, %v2270_v39  ;;  %v1886_v26 = vld [vmem:[#allocation2 + $0xd8] sm:$0xf]  ;;  %v1888_v32 = vld [vmem:[#allocation2 + $0xf8] sm:$0xf0] }
  0x55   :  { %v2563_v27 = vld [vmem:[#allocation2 + $0xf4] sm:$0xf0]  ;;  %v2144_v34 = vld [vmem:[#allocation2 + $0x2f8] sm:$0xf0]  ;;  %v1891_v37 = vor.u32 %v2559_v31, %v1888_v32  ;;  %v2661_v31 = vld [vmem:[%s3060_s3 + $0x8] sm:$0xff] }
  0x56   :  { %986 = vmatpush.bf16.msra.mxu0 %v1911_v51  ;;  %1012 = vmatpush.bf16.msra.mxu2 %v1915_v53  ;;  %v2019_v51 = vor.u32 %v2591_v42, %v2016_v43  ;;  %v2587_v53 = vld [vmem:[#allocation2 + $0x1b4] sm:$0xf0]  ;;  %v1887_v35 = vor.u32 %v2563_v27, %v1886_v26  ;;  %v2551_v43 = vld [vmem:[#allocation2 + $0x9c] sm:$0xf]  ;;  %v2680_v26 = vld [vmem:[%s3060_s3 + $0xa0] sm:$0xff] }
  0x57   :  { %v1854_v38 = vld [vmem:[#allocation2 + $0x98] sm:$0xf]  ;;  %v1824_v56 = vld [vmem:[#allocation2 + $0x78] sm:$0xf0]  ;;  %v2662_v27 = vld [vmem:[%s3060_s3 + $0x10] sm:$0xff] }
  0x58   :  { %999 = vmatpush.bf16.msra.mxu1 %v2167_v52  ;;  %1025 = vmatpush.bf16.msra.mxu3 %v2171_v57  ;;  %v1982_v52 = vld [vmem:[#allocation2 + $0x198] sm:$0xf]  ;;  %v2583_v57 = vld [vmem:[#allocation2 + $0x19c] sm:$0xf]  ;;  %v2688_v32 = vld [vmem:[%s3060_s3 + $0xe0] sm:$0xff] }
  0x59   :  { %v1983_v61 = vor.u32 %v2587_v53, %v1982_v52  ;;  %v2555_v39 = vld [vmem:[#allocation2 + $0xb4] sm:$0xf0]  ;;  %v1792_v6 = vld [vmem:[#allocation2 + $0x38] sm:$0xf0] }
  0x5a   :  { %987 = vmatpush.bf16.msra.mxu0 %v1879_v63  ;;  %1013 = vmatpush.bf16.msra.mxu2 %v1883_v2  ;;  %v1987_v63 = vor.u32 %v2583_v57, %v1984_v58  ;;  %v2579_v2 = vld [vmem:[#allocation2 + $0x174] sm:$0xf0]  ;;  %v1855_v47 = vor.u32 %v2555_v39, %v1854_v38  ;;  %v2607_v57 = vld [vmem:[#allocation2 + $0x25c] sm:$0xf]  ;;  %v2668_v39 = vld [vmem:[%s3060_s3 + $0x40] sm:$0xff] }
  0x5b   :  { %v2619_v42 = vld [vmem:[#allocation2 + $0x2b4] sm:$0xf0]  ;;  %v2080_v58 = vld [vmem:[#allocation2 + $0x278] sm:$0xf0] }
  0x5c   :  { %1000 = vmatpush.bf16.msra.mxu1 %v2135_v0  ;;  %1026 = vmatpush.bf16.msra.mxu3 %v2139_v7  ;;  %v1950_v0 = vld [vmem:[#allocation2 + $0x158] sm:$0xf]  ;;  %v2575_v7 = vld [vmem:[#allocation2 + $0x15c] sm:$0xf] }
  0x5d   :  { %v1951_v11 = vor.u32 %v2579_v2, %v1950_v0  ;;  %v2078_v52 = vld [vmem:[#allocation2 + $0x258] sm:$0xf]  ;;  %v2083_v2 = vor.u32 %v2607_v57, %v2080_v58 }
  0x5e   :  { %988 = vmatpush.bf16.msra.mxu0 %v1847_v13  ;;  %1014 = vmatpush.bf16.msra.mxu2 %v1851_v15  ;;  %v1955_v13 = vor.u32 %v2575_v7, %v1952_v8  ;;  %v2571_v15 = vld [vmem:[#allocation2 + $0x134] sm:$0xf0]  ;;  %v2599_v7 = vld [vmem:[#allocation2 + $0x21c] sm:$0xf] }
  0x5f   :  { %v2611_v54 = vld [vmem:[#allocation2 + $0x274] sm:$0xf0]  ;;  %v2048_v8 = vld [vmem:[#allocation2 + $0x238] sm:$0xf0] }
  0x60   :  { %1001 = vmatpush.bf16.msra.mxu1 %v2103_v14  ;;  %1027 = vmatpush.bf16.msra.mxu3 %v2107_v19  ;;  %v1918_v14 = vld [vmem:[#allocation2 + $0x118] sm:$0xf]  ;;  %v2567_v19 = vld [vmem:[#allocation2 + $0x11c] sm:$0xf]  ;;  %v2079_v60 = vor.u32 %v2611_v54, %v2078_v52 }
  0x61   :  { %v1919_v23 = vor.u32 %v2571_v15, %v1918_v14  ;;  %v2046_v0 = vld [vmem:[#allocation2 + $0x218] sm:$0xf] }
  0x62   :  { %989 = vmatpush.bf16.msra.mxu0 %v1815_v25  ;;  %1015 = vmatpush.bf16.msra.mxu2 %v1819_v29  ;;  %v1923_v25 = vor.u32 %v2567_v19, %v1920_v20  ;;  %v2179_v29 = vor.u32 %v2631_v21, %v2176_v22  ;;  %v2603_v3 = vld [vmem:[#allocation2 + $0x234] sm:$0xf0]  ;;  %v2665_v19 = vld [vmem:[%s3060_s3 + $0x28] sm:$0xff]  ;;  %v2672_v21 = vld [vmem:[%s3060_s3 + $0x60] sm:$0xff] }
  0x63   :  { %v2047_v10 = vor.u32 %v2603_v3, %v2046_v0  ;;  %v2675_v14 = vld [vmem:[%s3060_s3 + $0x78] sm:$0xff]  ;;  %v2673_v20 = vld [vmem:[%s3060_s3 + $0x68] sm:$0xff]  ;;  %v2696_v3 = vld [vmem:[%s3060_s3 + $0x120] sm:$0xff] }
  0x64   :  { %1002 = vmatpush.bf16.msra.mxu1 %v2071_v28  ;;  %1028 = vmatpush.bf16.msra.mxu3 %v2075_v33  ;;  %v2142_v28 = vld [vmem:[#allocation2 + $0x2d8] sm:$0xf]  ;;  %v2623_v33 = vld [vmem:[#allocation2 + $0x2dc] sm:$0xf]  ;;  %v2681_v22 = vld [vmem:[%s3060_s3 + $0xa8] sm:$0xff] }
  0x65   :  { %v2143_v36 = vor.u32 %v2627_v30, %v2142_v28  ;;  %v2147_v41 = vor.u32 %v2623_v33, %v2144_v34  ;;  %v2683_v15 = vld [vmem:[%s3060_s3 + $0xb8] sm:$0xff]  ;;  %v2689_v28 = vld [vmem:[%s3060_s3 + $0xe8] sm:$0xff]  ;;  %v2678_v34 = vld [vmem:[%s3060_s3 + $0x90] sm:$0xff] }
  0x66   :  { %990 = vmatpush.bf16.msra.mxu0 %v1783_v40  ;;  %1016 = vmatpush.bf16.msra.mxu2 %v1787_v45  ;;  %v2110_v40 = vld [vmem:[#allocation2 + $0x298] sm:$0xf]  ;;  %v2615_v45 = vld [vmem:[#allocation2 + $0x29c] sm:$0xf]  ;;  %v2669_v33 = vld [vmem:[%s3060_s3 + $0x48] sm:$0xff] }
  0x67   :  { %v2115_v53 = vor.u32 %v2615_v45, %v2112_v46  ;;  %v2679_v30 = vld [vmem:[%s3060_s3 + $0x98] sm:$0xff]  ;;  %v2676_v46 = vld [vmem:[%s3060_s3 + $0x80] sm:$0xff] }
  0x68   :  { %1003 = vmatpush.bf16.msra.mxu1 %v2039_v44  ;;  %1029 = vmatpush.bf16.msra.mxu3 %v2043_v48  ;;  %v1856_v44 = vld [vmem:[#allocation2 + $0xb8] sm:$0xf0]  ;;  %v2111_v48 = vor.u32 %v2619_v42, %v2110_v40  ;;  %v2677_v40 = vld [vmem:[%s3060_s3 + $0x88] sm:$0xff] }
  0x69   :  { %991 = vmatmul.bf16.vlgmr.msra.gmra.mxu0 %v2823_v1  ;;  %1017 = vmatmul.bf16.vlgmr.msra.gmra.mxu2 %v2823_v1 }
  0x6a   :  { %1035 = vmatpush.bf16.msrb.mxu0 %v2015_v49  ;;  %1061 = vmatpush.bf16.msrb.mxu2 %v2019_v51  ;;  %v1859_v49 = vor.u32 %v2551_v43, %v1856_v44  ;;  %v2547_v51 = vld [vmem:[#allocation2 + $0x74] sm:$0xf0] }
  0x6b   :  { %1004 = vmatmul.bf16.vlgmr.msra.gmra.mxu1 %v2825_v4  ;;  %1030 = vmatmul.bf16.vlgmr.msra.gmra.mxu3 %v2825_v4 }
  0x6c   :  { %1048 = vmatpush.bf16.msrb.mxu1 %v2271_v50  ;;  %1074 = vmatpush.bf16.msrb.mxu3 %v2275_v55  ;;  %v1822_v50 = vld [vmem:[#allocation2 + $0x58] sm:$0xf]  ;;  %v2543_v55 = vld [vmem:[#allocation2 + $0x5c] sm:$0xf] }
  0x6d   :  { %v1823_v59 = vor.u32 %v2547_v51, %v1822_v50 }
  0x6e   :  { %1036 = vmatpush.bf16.msrb.mxu0 %v1983_v61  ;;  %1062 = vmatpush.bf16.msrb.mxu2 %v1987_v63  ;;  %v1827_v61 = vor.u32 %v2543_v55, %v1824_v56  ;;  %v2539_v63 = vld [vmem:[#allocation2 + $0x34] sm:$0xf0]  ;;  %v2684_v56 = vld [vmem:[%s3060_s3 + $0xc0] sm:$0xff] }
  0x70   :  { %1049 = vmatpush.bf16.msrb.mxu1 %v2239_v62  ;;  %1075 = vmatpush.bf16.msrb.mxu3 %v2243_v5  ;;  %v1790_v62 = vld [vmem:[#allocation2 + $0x18] sm:$0xf]  ;;  %v2535_v5 = vld [vmem:[#allocation2 + $0x1c] sm:$0xf] }
  0x71   :  { %v1791_v9 = vor.u32 %v2539_v63, %v1790_v62  ;;  %v2697_v62 = vld [vmem:[%s3060_s3 + $0x128] sm:$0xff]  ;;  %v2706_v63 = vld [vmem:[%s3060_s3 + $0x170] sm:$0xff] }
  0x72   :  { %1037 = vmatpush.bf16.msrb.mxu0 %v1951_v11  ;;  %1063 = vmatpush.bf16.msrb.mxu2 %v1955_v13  ;;  %v1795_v11 = vor.u32 %v2535_v5, %v1792_v6  ;;  %v2667_v13 = vld [vmem:[%s3060_s3 + $0x38] sm:$0xff]  ;;  %v2705_v6 = vld [vmem:[%s3060_s3 + $0x168] sm:$0xff] }
  0x74   :  { %1050 = vmatpush.bf16.msrb.mxu1 %v2207_v12  ;;  %1076 = vmatpush.bf16.msrb.mxu3 %v2211_v17  ;;  %v2051_v12 = vor.u32 %v2599_v7, %v2048_v8  ;;  %v2674_v17 = vld [vmem:[%s3060_s3 + $0x70] sm:$0xff]  ;;  %v2695_v7 = vld [vmem:[%s3060_s3 + $0x118] sm:$0xff]  ;;  %v2704_v8 = vld [vmem:[%s3060_s3 + $0x160] sm:$0xff] }
  0x76   :  { %1038 = vmatpush.bf16.msrb.mxu0 %v1919_v23  ;;  %1064 = vmatpush.bf16.msrb.mxu2 %v1923_v25  ;;  %v2663_v23 = vld [vmem:[%s3060_s3 + $0x18] sm:$0xff] }
  0x77   :  { %v2671_v25 = vld [vmem:[%s3060_s3 + $0x58] sm:$0xff] }
  0x78   :  { %1051 = vmatpush.bf16.msrb.mxu1 %v2175_v24  ;;  %1077 = vmatpush.bf16.msrb.mxu3 %v2179_v29  ;;  %v2690_v24 = vld [vmem:[%s3060_s3 + $0xf0] sm:$0xff] }
  0x79   :  { %v2670_v29 = vld [vmem:[%s3060_s3 + $0x50] sm:$0xff] }
  0x7a   :  { %1039 = vmatpush.bf16.msrb.mxu0 %v1887_v35  ;;  %1065 = vmatpush.bf16.msrb.mxu2 %v1891_v37  ;;  %v2918_v35 = vld [vmem:[%s3059_s2] sm:$0xff]  ;;  %v2687_v37 = vld [vmem:[%s3060_s3 + $0xd8] sm:$0xff] }
  0x7b   :  { %v216_v38 = vperm.slane %v2918_v35, 0  ;;  %v217_v45 = vperm.slane %v2918_v35, 1 }
  0x7c   :  { %1052 = vmatpush.bf16.msrb.mxu1 %v2143_v36  ;;  %1078 = vmatpush.bf16.msrb.mxu3 %v2147_v41  ;;  %v2660_v36 = vld [vmem:[%s3060_s3] sm:$0xff]  ;;  %v2686_v41 = vld [vmem:[%s3060_s3 + $0xd0] sm:$0xff] }
  0x7e   :  { %1040 = vmatpush.bf16.msrb.mxu0 %v1855_v47  ;;  %1066 = vmatpush.bf16.msrb.mxu2 %v1859_v49  ;;  %v2699_v47 = vld [vmem:[%s3060_s3 + $0x138] sm:$0xff]  ;;  %v2685_v49 = vld [vmem:[%s3060_s3 + $0xc8] sm:$0xff] }
  0x80   :  { %1053 = vmatpush.bf16.msrb.mxu1 %v2111_v48  ;;  %1079 = vmatpush.bf16.msrb.mxu3 %v2115_v53  ;;  %v2698_v53 = vld [vmem:[%s3060_s3 + $0x130] sm:$0xff] }
  0x82   :  { %1041 = vmatpush.bf16.msrb.mxu0 %v1823_v59  ;;  %1067 = vmatpush.bf16.msrb.mxu2 %v1827_v61  ;;  %v2707_v59 = vld [vmem:[%s3060_s3 + $0x178] sm:$0xff] }
  0x84   :  { %1054 = vmatpush.bf16.msrb.mxu1 %v2079_v60  ;;  %1080 = vmatpush.bf16.msrb.mxu3 %v2083_v2 }
  0x86   :  { %1042 = vmatpush.bf16.msrb.mxu0 %v1791_v9  ;;  %1068 = vmatpush.bf16.msrb.mxu2 %v1795_v11  ;;  %v2694_v9 = vld [vmem:[%s3060_s3 + $0x110] sm:$0xff]  ;;  %v2703_v11 = vld [vmem:[%s3060_s3 + $0x158] sm:$0xff] }
  0x88   :  { %1055 = vmatpush.bf16.msrb.mxu1 %v2047_v10  ;;  %1081 = vmatpush.bf16.msrb.mxu3 %v2051_v12  ;;  %v218_v10 = vperm.slane %v2918_v35, 2 }
  0x89   :  { %1043 = vmatmul.bf16.vlgmr.msrb.gmra.mxu0 %v2823_v1  ;;  %1069 = vmatmul.bf16.vlgmr.msrb.gmra.mxu2 %v2823_v1  ;;  %v2664_v1 = vld [vmem:[%s3060_s3 + $0x20] sm:$0xff] }
  0x8a   :  { %1616 = vmatpush.bf16.msra.mxu0 %v2667_v13  ;;  %1642 = vmatpush.bf16.msra.mxu2 %v2683_v15  ;;  %v2693_v13 = vld [vmem:[%s3060_s3 + $0x108] sm:$0xff] }
  0x8b   :  { %1056 = vmatmul.bf16.vlgmr.msrb.gmra.mxu1 %v2825_v4  ;;  %1082 = vmatmul.bf16.vlgmr.msrb.gmra.mxu3 %v2825_v4  ;;  %v2691_v4 = vld [vmem:[%s3060_s3 + $0xf8] sm:$0xff] }
  0x8c   :  { %1629 = vmatpush.bf16.msra.mxu1 %v2675_v14  ;;  %1655 = vmatpush.bf16.msra.mxu3 %v2691_v4  ;;  %v2701_v4 = vld [vmem:[%s3060_s3 + $0x148] sm:$0xff] }
  0x8e   :  { %1617 = vmatpush.bf16.msra.mxu0 %v2666_v16  ;;  %1643 = vmatpush.bf16.msra.mxu2 %v2682_v18  ;;  %v2702_v16 = vld [vmem:[%s3060_s3 + $0x150] sm:$0xff]  ;;  %v219_v18 = vperm.slane %v2918_v35, 3 }
  0x90   :  { %1630 = vmatpush.bf16.msra.mxu1 %v2674_v17  ;;  %1656 = vmatpush.bf16.msra.mxu3 %v2690_v24 }
  0x92   :  { %1618 = vmatpush.bf16.msra.mxu0 %v2665_v19  ;;  %1644 = vmatpush.bf16.msra.mxu2 %v2681_v22  ;;  %v2692_v19 = vld [vmem:[%s3060_s3 + $0x100] sm:$0xff] }
  0x94   :  { %1631 = vmatpush.bf16.msra.mxu1 %v2673_v20  ;;  %1657 = vmatpush.bf16.msra.mxu3 %v2689_v28 }
  0x96   :  { %1619 = vmatpush.bf16.msra.mxu0 %v2664_v1  ;;  %1645 = vmatpush.bf16.msra.mxu2 %v2680_v26  ;;  %v2715_v1 = vld [vmem:[%s3060_s3 + $0x1b8] sm:$0xff] }
  0x98   :  { %1632 = vmatpush.bf16.msra.mxu1 %v2672_v21  ;;  %1658 = vmatpush.bf16.msra.mxu3 %v2688_v32  ;;  %v2713_v32 = vld [vmem:[%s3060_s3 + $0x1a8] sm:$0xff] }
  0x9a   :  { %1620 = vmatpush.bf16.msra.mxu0 %v2663_v23  ;;  %1646 = vmatpush.bf16.msra.mxu2 %v2679_v30  ;;  %v2723_v30 = vld [vmem:[%s3060_s3 + $0x1f8] sm:$0xff] }
  0x9c   :  { %1633 = vmatpush.bf16.msra.mxu1 %v2671_v25  ;;  %1659 = vmatpush.bf16.msra.mxu3 %v2687_v37  ;;  %v2712_v37 = vld [vmem:[%s3060_s3 + $0x1a0] sm:$0xff] }
  0x9e   :  { %1621 = vmatpush.bf16.msra.mxu0 %v2662_v27  ;;  %1647 = vmatpush.bf16.msra.mxu2 %v2678_v34  ;;  %v2714_v27 = vld [vmem:[%s3060_s3 + $0x1b0] sm:$0xff] }
  0x9f   :  { %v2722_v34 = vld [vmem:[%s3060_s3 + $0x1f0] sm:$0xff] }
  0xa0   :  { %1634 = vmatpush.bf16.msra.mxu1 %v2670_v29  ;;  %1660 = vmatpush.bf16.msra.mxu3 %v2686_v41  ;;  %v2700_v29 = vld [vmem:[%s3060_s3 + $0x140] sm:$0xff] }
  0xa1   :  { %v2720_v41 = vld [vmem:[%s3060_s3 + $0x1e0] sm:$0xff] }
  0xa2   :  { %1622 = vmatpush.bf16.msra.mxu0 %v2661_v31  ;;  %1648 = vmatpush.bf16.msra.mxu2 %v2677_v40  ;;  %v2711_v40 = vld [vmem:[%s3060_s3 + $0x198] sm:$0xff] }
  0xa4   :  { %1635 = vmatpush.bf16.msra.mxu1 %v2669_v33  ;;  %1661 = vmatpush.bf16.msra.mxu3 %v2685_v49  ;;  %v2718_v49 = vld [vmem:[%s3060_s3 + $0x1d0] sm:$0xff] }
  0xa6   :  { %1623 = vmatpush.bf16.msra.mxu0 %v2660_v36  ;;  %1649 = vmatpush.bf16.msra.mxu2 %v2676_v46 }
  0xa8   :  { %1636 = vmatpush.bf16.msra.mxu1 %v2668_v39  ;;  %v888_v42 = vpop.f32.mrf.mxu0  ;;  %1662 = vmatpush.bf16.msra.mxu3 %v2684_v56  ;;  %v2721_v39 = vld [vmem:[%s3060_s3 + $0x1e8] sm:$0xff] }
  0xa9   :  { %v889_v43 = vadd.f32 %v888_v42, %v216_v38  ;;  %v2710_v42 = vld [vmem:[%s3060_s3 + $0x190] sm:$0xff] }
  0xaa   :  { %v901_v44 = vpop.f32.mrf.mxu1  ;;  %1668 = vmatpush.bf16.msrb.mxu0 %v2699_v47  ;;  %1694 = vmatpush.bf16.msrb.mxu2 %v2715_v1 }
  0xab   :  { %v902_v48 = vadd.f32 %v901_v44, %v889_v43  ;;  %v220_v43 = vperm.slane %v2918_v35, 4  ;;  %v2719_v44 = vld [vmem:[%s3060_s3 + $0x1d8] sm:$0xff] }
  0xac   :  { %1681 = vmatpush.bf16.msrb.mxu1 %v2707_v59  ;;  %1707 = vmatpush.bf16.msrb.mxu3 %v2723_v30  ;;  %v2785_v30 = vmov 0.0  }
  0xad   :  { %v1087_v51 = vmax.f32 %v902_v48, 0.0  ;;  %84 = vst.msk [vmem:[#allocation5] sm:$0xff] %vm83_vm0, %v2785_v30 }
  0xae   :  { %v914_v50 = vpop.f32.mrf.mxu2  ;;  %1669 = vmatpush.bf16.msrb.mxu0 %v2698_v53  ;;  %1695 = vmatpush.bf16.msrb.mxu2 %v2714_v27 }
  0xaf   :  { %v915_v52 = vadd.f32 %v914_v50, %v217_v45  ;;  %v1096_v54 = vpack.c.bf16 %v1087_v51, %v1087_v51  ;;  %v2709_v45 = vld [vmem:[%s3060_s3 + $0x188] sm:$0xff]  ;;  %v2708_v51 = vld [vmem:[%s3060_s3 + $0x180] sm:$0xff] }
  0xb0   :  { %v927_v55 = vpop.f32.mrf.mxu3  ;;  %v890_v57 = vpop.f32.mrf.mxu0  ;;  %1682 = vmatpush.bf16.msrb.mxu1 %v2706_v63  ;;  %1708 = vmatpush.bf16.msrb.mxu3 %v2722_v34 }
  0xb1   :  { %v928_v58 = vadd.f32 %v927_v55, %v915_v52  ;;  %1624 = vmatmul.bf16.vlgmr.msra.gmra.mxu0 %v1096_v54  ;;  %v221_v52 = vperm.slane %v2918_v35, 5  ;;  %v2717_v54 = vld [vmem:[%s3060_s3 + $0x1c8] sm:$0xff] }
  0xb2   :  { %v903_v60 = vpop.f32.mrf.mxu1  ;;  %1670 = vmatpush.bf16.msrb.mxu0 %v2697_v62  ;;  %1696 = vmatpush.bf16.msrb.mxu2 %v2713_v32 }
  0xb3   :  { %v1088_v61 = vmax.f32 %v928_v58, 0.0 }
  0xb4   :  { %1683 = vmatpush.bf16.msrb.mxu1 %v2705_v6  ;;  %1709 = vmatpush.bf16.msrb.mxu3 %v2721_v39 }
  0xb5   :  { %v1097_v0 = vpack.c.bf16 %v1088_v61, %v1088_v61  ;;  %v2716_v61 = vld [vmem:[%s3060_s3 + $0x1c0] sm:$0xff] }
  0xb6   :  { %v916_v2 = vpop.f32.mrf.mxu2  ;;  %1671 = vmatpush.bf16.msrb.mxu0 %v2696_v3  ;;  %1697 = vmatpush.bf16.msrb.mxu2 %v2712_v37 }
  0xb7   :  { %1637 = vmatmul.bf16.vlgmr.msra.gmra.mxu1 %v1097_v0 }
  0xb8   :  { %v929_v5 = vpop.f32.mrf.mxu3  ;;  %1684 = vmatpush.bf16.msrb.mxu1 %v2704_v8  ;;  %1710 = vmatpush.bf16.msrb.mxu3 %v2720_v41  ;;  %v1095_v41 = vld [vmem:[#allocation5] sm:$0xff] }
  0xb9   :  { %v222_v5 = vperm.slane %v2918_v35, 6 }
  0xba   :  { %1672 = vmatpush.bf16.msrb.mxu0 %v2695_v7  ;;  %1698 = vmatpush.bf16.msrb.mxu2 %v2711_v40 }
  0xbc   :  { %1685 = vmatpush.bf16.msrb.mxu1 %v2703_v11  ;;  %1711 = vmatpush.bf16.msrb.mxu3 %v2719_v44 }
  0xbe   :  { %1673 = vmatpush.bf16.msrb.mxu0 %v2694_v9  ;;  %1699 = vmatpush.bf16.msrb.mxu2 %v2710_v42 }
  0xc0   :  { %1686 = vmatpush.bf16.msrb.mxu1 %v2702_v16  ;;  %1712 = vmatpush.bf16.msrb.mxu3 %v2718_v49 }
  0xc2   :  { %1674 = vmatpush.bf16.msrb.mxu0 %v2693_v13  ;;  %1700 = vmatpush.bf16.msrb.mxu2 %v2709_v45 }
  0xc4   :  { %1687 = vmatpush.bf16.msrb.mxu1 %v2701_v4  ;;  %1713 = vmatpush.bf16.msrb.mxu3 %v2717_v54 }
  0xc6   :  { %v940_v12 = vpop.f32.mrf.mxu0  ;;  %1675 = vmatpush.bf16.msrb.mxu0 %v2692_v19  ;;  %1701 = vmatpush.bf16.msrb.mxu2 %v2708_v51 }
  0xc7   :  { %v941_v14 = vadd.f32 %v940_v12, %v218_v10  ;;  %v223_v10 = vperm.slane %v2918_v35, 7 }
  0xc8   :  { %v953_v15 = vpop.f32.mrf.mxu1  ;;  %1688 = vmatpush.bf16.msrb.mxu1 %v2700_v29  ;;  %1714 = vmatpush.bf16.msrb.mxu3 %v2716_v61 }
  0xc9   :  { %v954_v17 = vadd.f32 %v953_v15, %v941_v14 }
  0xcb   :  { %v1089_v20 = vmax.f32 %v954_v17, 0.0 }
  0xcc   :  { %v966_v22 = vpop.f32.mrf.mxu2 }
  0xcd   :  { %v1098_v21 = vpack.c.bf16 %v1089_v20, %v1089_v20  ;;  %v967_v23 = vadd.f32 %v966_v22, %v219_v18 }
  0xce   :  { %v979_v24 = vpop.f32.mrf.mxu3  ;;  %v942_v25 = vpop.f32.mrf.mxu0 }
  0xcf   :  { %1650 = vmatmul.bf16.vlgmr.msra.gmra.mxu2 %v1098_v21  ;;  %v980_v28 = vadd.f32 %v979_v24, %v967_v23 }
  0xd0   :  { %v955_v26 = vpop.f32.mrf.mxu1 }
  0xd1   :  { %v1090_v31 = vmax.f32 %v980_v28, 0.0 }
  0xd3   :  { %v1099_v33 = vpack.c.bf16 %v1090_v31, %v1090_v31 }
  0xd4   :  { %v968_v36 = vpop.f32.mrf.mxu2 }
  0xd5   :  { %1663 = vmatmul.bf16.vlgmr.msra.gmra.mxu3 %v1099_v33 }
  0xd6   :  { %v981_v38 = vpop.f32.mrf.mxu3 }
  0xe6   :  { %v992_v46 = vpop.f32.mrf.mxu0 }
  0xe7   :  { %v993_v47 = vadd.f32 %v992_v46, %v220_v43 }
  0xe8   :  { %v1005_v48 = vpop.f32.mrf.mxu1 }
  0xe9   :  { %v1006_v50 = vadd.f32 %v1005_v48, %v993_v47  ;;  %v2729_v47 = vld [vmem:[%s3061_s4] ss:$0 sm:$0xff] }
  0xeb   :  { %v1091_v53 = vmax.f32 %v1006_v50, 0.0 }
  0xec   :  { %v1018_v56 = vpop.f32.mrf.mxu2 }
  0xed   :  { %v1100_v55 = vpack.c.bf16 %v1091_v53, %v1091_v53  ;;  %v1019_v57 = vadd.f32 %v1018_v56, %v221_v52 }
  0xee   :  { %v1031_v58 = vpop.f32.mrf.mxu3  ;;  %v994_v59 = vpop.f32.mrf.mxu0 }
  0xef   :  { %1676 = vmatmul.bf16.vlgmr.msrb.gmra.mxu0 %v1100_v55  ;;  %v1032_v62 = vadd.f32 %v1031_v58, %v1019_v57 }
  0xf0   :  { %v1007_v60 = vpop.f32.mrf.mxu1 }
  0xf1   :  { %v1092_v63 = vmax.f32 %v1032_v62, 0.0 }
  0xf3   :  { %v1101_v0 = vpack.c.bf16 %v1092_v63, %v1092_v63 }
  0xf4   :  { %v1020_v2 = vpop.f32.mrf.mxu2 }
  0xf5   :  { %1689 = vmatmul.bf16.vlgmr.msrb.gmra.mxu1 %v1101_v0 }
  0xf6   :  { %v1033_v3 = vpop.f32.mrf.mxu3 }
 0x106   :  { %v1044_v6 = vpop.f32.mrf.mxu0 }
 0x107   :  { %v1045_v7 = vadd.f32 %v1044_v6, %v222_v5 }
 0x108   :  { %v1057_v8 = vpop.f32.mrf.mxu1 }
 0x109   :  { %v1058_v9 = vadd.f32 %v1057_v8, %v1045_v7 }
 0x10b   :  { %v1093_v11 = vmax.f32 %v1058_v9, 0.0 }
 0x10c   :  { %v1070_v13 = vpop.f32.mrf.mxu2 }
 0x10d   :  { %v1102_v12 = vpack.c.bf16 %v1093_v11, %v1093_v11  ;;  %v1071_v14 = vadd.f32 %v1070_v13, %v223_v10 }
 0x10e   :  { %v1083_v15 = vpop.f32.mrf.mxu3  ;;  %v1046_v16 = vpop.f32.mrf.mxu0 }
 0x10f   :  { %1702 = vmatmul.bf16.vlgmr.msrb.gmra.mxu2 %v1102_v12  ;;  %v1084_v18 = vadd.f32 %v1083_v15, %v1071_v14 }
 0x110   :  { %v1059_v17 = vpop.f32.mrf.mxu1 }
 0x111   :  { %v1094_v19 = vmax.f32 %v1084_v18, 0.0 }
 0x113   :  { %v1103_v20 = vpack.c.bf16 %v1094_v19, %v1094_v19 }
 0x114   :  { %v1072_v1 = vpop.f32.mrf.mxu2 }
 0x115   :  { %1715 = vmatmul.bf16.vlgmr.msrb.gmra.mxu3 %v1103_v20 }
 0x116   :  { %v1085_v4 = vpop.f32.mrf.mxu3 }
 0x12e   :  { %v1625_v21 = vpop.f32.mrf.mxu0 }
 0x134   :  { %v1638_v22 = vpop.f32.mrf.mxu1 }
 0x135   :  { %v1639_v23 = vadd.f32 %v1638_v22, %v1625_v21 }
 0x136   :  { %v1627_v24 = vpop.f32.mrf.mxu0 }
 0x13c   :  { %v1640_v25 = vpop.f32.mrf.mxu1 }
 0x152   :  { %v1651_v35 = vpop.f32.mrf.mxu2 }
 0x153   :  { %v1652_v34 = vadd.f32 %v1651_v35, %v1639_v23 }
 0x158   :  { %v1664_v26 = vpop.f32.mrf.mxu3 }
 0x159   :  { %v1665_v36 = vadd.f32 %v1664_v26, %v1652_v34 }
 0x15a   :  { %v1653_v27 = vpop.f32.mrf.mxu2 }
 0x160   :  { %v1666_v28 = vpop.f32.mrf.mxu3 }
 0x16c   :  { %v1677_v29 = vpop.f32.mrf.mxu0 }
 0x16d   :  { %v1678_v38 = vadd.f32 %v1677_v29, %v1665_v36 }
 0x172   :  { %v1690_v31 = vpop.f32.mrf.mxu1 }
 0x173   :  { %v1691_v39 = vadd.f32 %v1690_v31, %v1678_v38 }
 0x174   :  { %v1679_v32 = vpop.f32.mrf.mxu0 }
 0x17a   :  { %v1692_v33 = vpop.f32.mrf.mxu1 }
 0x192   :  { %v1703_v37 = vpop.f32.mrf.mxu2 }
 0x193   :  { %v1704_v40 = vadd.f32 %v1703_v37, %v1691_v39 }
 0x198   :  { %v1716_v42 = vpop.f32.mrf.mxu3 }
 0x199   :  { %v1717_v43 = vadd.f32 %v1716_v42, %v1704_v40 }
 0x19a   :  { %v1705_v44 = vpop.f32.mrf.mxu2 }
 0x19b   :  { %v1720_v45 = vadd.f32 %v1717_v43, %v1095_v41 }
 0x19d   :  { %1722 = vst.msk [vmem:[#allocation5] sm:$0xff] %vm83_vm0, %v1720_v45 }
 0x1a0   :  { %v1718_v46 = vpop.f32.mrf.mxu3 }
 0x1a4   :  { %v1728_v48 = vld [vmem:[#allocation5] sm:$0xff] }
 0x1a5   :  { %v1733_v49 = vadd.f32 %v2729_v47, %v1728_v48 }
 0x1a7   :  { %1734 = vst.msk [vmem:[#allocation5] sm:$0xff] %vm83_vm0, %v1733_v49 }
 0x1a8   :  { %1745 = dma.vmem_to_hbm [thread:$0]  %s1741_s21, 128, %s1743_s24, [#allocation4]  }
 0x1a9   :  { %2780 = dma.done.wait [#allocation4], 128  }
 0x1aa   :  { %2781 = vsyncadd [#allocation4], 4294967168 }
 0x1ab   :  { %1750 = vsyncpa [#allocation3], 1 }
 0x1ac   :  { %1751 = vsyncpa [#allocation4], 1 }

</bundles_post_ra>
